<compile_context>
chip_gen: v5e
topology: v5e:2x2
jax: 0.10.0
libtpu: 0.0.40
codegen_flags: <defaults>
</compile_context>

<pallas_src>
import jax
import jax.numpy as jnp
from jax.experimental import pallas as pl
from jax.experimental.pallas import tpu as pltpu

# ----------------------------------------------------------------------------
# Deterministic "parameter" initialization (synthetic, no checkpoint):
#   - one stationary squared-exponential (RBF) base kernel with unit hyperparams
#   - LazyWhite signal (unused by forward(), kept for structural parity)
# ----------------------------------------------------------------------------
SIGNAL_VAR = 1.0          # RBF signal variance
LENGTHSCALE = 1.0         # RBF lengthscale
WHITE_SIGNAL = 0.05       # LazyWhite._signal (only used in cov_factor, not forward)


def _vmem_limit_bytes():
    """~3/4 of physical VMEM: ~48 MiB on v7x (64 MiB), ~96 MiB on v5e/v6e (128 MiB)."""
    try:
        cap = pltpu.get_tpu_info().vmem_capacity_bytes
    except Exception:
        cap = 64 * 1024 * 1024            # conservative fallback (v7x-sized)
    return int(cap * 3 // 4)


_VMEM_LIMIT = _vmem_limit_bytes()


# ----------------------------------------------------------------------------
# Tiling helpers
# ----------------------------------------------------------------------------
def _round_up(n, mult):
    return -(-n // mult) * mult


def _plan(n):
    """Return (n_pad, row_tile, col_tile) for a point count n.

    Columns are padded to >=128 (lane-dense, unmasked stores); rows split into
    at least 2 tiles whenever possible so both v7x TensorCores get work.
    """
    if n <= 512:
        n_pad = _round_up(max(n, 128), 128)
        tm = max(8, n_pad // 2)            # >=2 row tiles -> megacore split
        tn = n_pad                         # single lane-dense column slab
        return n_pad, tm, tn
    n_pad = _round_up(n, 512)
    return n_pad, 512, 512                 # big MXU-sized tiles: max B reuse


def _pad_rows(x, n_pad):
    n = x.shape[0]
    if n_pad == n:
        return x
    return jnp.pad(x, ((0, n_pad - n), (0, 0)))


def _pad_inducing(z, mt):
    """Pad inducing count to a multiple of 128. Padded M.T rows/cols are zero so
    padded Q columns are exactly zero and results are unchanged."""
    m = z.shape[0]
    m_pad = _round_up(max(m, 128), 128)
    if m_pad != m:
        z = jnp.pad(z, ((0, m_pad - m), (0, 0)))
        mt = jnp.pad(mt, ((0, m_pad - m), (0, m_pad - m)))
    return z, mt, m_pad


# ----------------------------------------------------------------------------
# Pallas kernel 1: fused RBF row-tile + projection
#   Q[i, :] = [ s * exp(-0.5*|x_i - z_j|^2 / l^2) ]_j @ M.T
# The (tm, m_pad) kernel-matrix tile lives only in VMEM; Q is stored as bf16.
# ----------------------------------------------------------------------------
def _rbf_project_body(x_ref, z_ref, zn_ref, mt_ref, o_ref):
    xt = x_ref[...]                                                    # (tm, d) f32
    z = z_ref[...]                                                     # (m_pad, d) f32
    # x . z^T via MXU, contract over feature dim (no explicit transpose).
    # Kept f32: feeds the exp through a subtraction (precision-sensitive).
    xz = jax.lax.dot_general(xt, z, (((1,), (1,)), ((), ())),
                             preferred_element_type=jnp.float32)       # (tm, m_pad)
    x2 = jnp.sum(xt * xt, axis=1, keepdims=True)                       # (tm, 1)
    r2 = jnp.maximum(x2 + zn_ref[...] - 2.0 * xz, 0.0)                 # (tm, m_pad)
    # exp stays f32 (v5e EUP has no bf16); only the MXU operands go bf16.
    k = SIGNAL_VAR * jnp.exp((-0.5 / (LENGTHSCALE * LENGTHSCALE)) * r2)
    q = jnp.dot(k.astype(jnp.bfloat16), mt_ref[...],                   # mt is bf16
                preferred_element_type=jnp.float32)                    # f32 accumulate
    o_ref[...] = q.astype(o_ref.dtype)                                 # bf16 store


def rbf_project(x_padded, z_padded, mt_bf16, tm):
    """Q = K(x, z) @ mt (bf16 output), tiled over rows of x."""
    n_pad, d = x_padded.shape
    m_pad = z_padded.shape[0]
    zn2 = jnp.sum(z_padded * z_padded, axis=1)[None, :]   # (1, m_pad), hoisted once
    # TODO(synk): for very large m on v7x, give the constant operands (z, zn2, mt)
    #             pipeline_mode=pl.Buffered(1) so the resident copies aren't doubled.
    return pl.pallas_call(
        _rbf_project_body,
        out_shape=jax.ShapeDtypeStruct((n_pad, m_pad), jnp.bfloat16),
        grid=(n_pad // tm,),
        in_specs=[
            pl.BlockSpec((tm, d), lambda i: (i, 0)),          # row tile of x
            pl.BlockSpec((m_pad, d), lambda i: (0, 0)),       # all inducing points
            pl.BlockSpec((1, m_pad), lambda i: (0, 0)),       # precomputed |z|^2
            pl.BlockSpec((m_pad, m_pad), lambda i: (0, 0)),   # M.T (bf16)
        ],
        out_specs=pl.BlockSpec((tm, m_pad), lambda i: (i, 0)),
        compiler_params=pltpu.CompilerParams(
            dimension_semantics=("parallel",),
            vmem_limit_bytes=_VMEM_LIMIT),
    )(x_padded, z_padded, zn2, mt_bf16)


# ----------------------------------------------------------------------------
# Pallas kernel 2: out = A @ B.T (bf16 in, f32 out), 2D grid over row tiles of A/B
# ----------------------------------------------------------------------------
def _abt_body(a_ref, b_ref, o_ref):
    o_ref[...] = jax.lax.dot_general(
        a_ref[...], b_ref[...], (((1,), (1,)), ((), ())),
        preferred_element_type=jnp.float32)


def abt_matmul(a, b, tm, tn):
    """A: (n1, m) bf16, B: (n2, m) bf16 -> A @ B.T : (n1, n2) f32."""
    n1, m = a.shape
    n2, _ = b.shape
    # TODO(synk): when B is A (symmetric forward), the lower-triangle tiles could
    #             be skipped via a PrefetchScalarGridSpec over (i<=j) tile pairs
    #             and mirrored afterwards (~1.6-1.9x on kernel 2).
    return pl.pallas_call(
        _abt_body,
        out_shape=jax.ShapeDtypeStruct((n1, n2), jnp.float32),
        grid=(n1 // tm, n2 // tn),
        in_specs=[
            pl.BlockSpec((tm, m), lambda i, j: (i, 0)),
            pl.BlockSpec((tn, m), lambda i, j: (j, 0)),
        ],
        out_specs=pl.BlockSpec((tm, tn), lambda i, j: (i, j)),
        compiler_params=pltpu.CompilerParams(
            dimension_semantics=("parallel", "parallel"),
            vmem_limit_bytes=_VMEM_LIMIT),
    )(a, b)


# ----------------------------------------------------------------------------
# Plain-JAX glue (small m x m linear algebra, as in the torch module)
# ----------------------------------------------------------------------------
def rbf_dense(a, b):
    """Dense RBF for the tiny (m, m) Kzz only."""
    r2 = jnp.sum((a[:, None, :] - b[None, :, :]) ** 2, axis=-1)
    return SIGNAL_VAR * jnp.exp(-0.5 * r2 / (LENGTHSCALE * LENGTHSCALE))


def jitcholesky(a, jitters=(1e-6, 1e-4, 1e-2, 1.0)):
    """Cholesky with a fixed jitter ladder: pick the smallest jitter whose
    factorization is NaN-free (JAX-friendly stand-in for the retry loop)."""
    n = a.shape[0]
    eye = jnp.eye(n, dtype=a.dtype)
    chols = [jnp.linalg.cholesky(a + j * eye) for j in jitters]
    out = chols[-1]
    for c in reversed(chols[:-1]):
        out = jnp.where(jnp.any(jnp.isnan(c)), out, c)
    return out


def inducing_forward(x, xind, xx=None):
    """Inducing.forward(x, xx, operation='func') == K(x,Z) Kzz^{-1} K(Z,xx)."""
    x = x.astype(jnp.float32)
    xind = xind.astype(jnp.float32)
    n = x.shape[0]

    kzz = rbf_dense(xind, xind)                      # tiny (m, m): plain JAX
    chol = jitcholesky(kzz)
    minv = jnp.linalg.inv(chol)                      # chol.inverse()
    mt = minv.T                                      # (m, m)

    # pad inducing dim to a multiple of 128 (lane-dense Q, MXU-aligned K dim)
    z_pad, mt_pad, _ = _pad_inducing(xind, mt)
    mt_bf16 = mt_pad.astype(jnp.bfloat16)

    n_pad, tm, tn = _plan(n)
    q = rbf_project(_pad_rows(x, n_pad), z_pad, mt_bf16, tm)      # K(x,Z) @ M.T

    if xx is None or xx is x:
        q2, n2, tn_cols = q, n, tn                   # symmetry: right = left.T
    else:
        xx = xx.astype(jnp.float32)
        n2 = xx.shape[0]
        n2_pad, tm2, tn_cols = _plan(n2)
        q2 = rbf_project(_pad_rows(xx, n2_pad), z_pad, mt_bf16, tm2)  # K(xx,Z) @ M.T

    out = abt_matmul(q, q2, tm, tn_cols)             # Q @ Q2.T == L M.T M R (f32)
    return out[:n, :n2]                              # drop padded rows/cols


# ----------------------------------------------------------------------------
if __name__ == "__main__":
    key = jax.random.PRNGKey(0)
    N, D, M_IND = 16, 4, 8                 # small shapes: 16 points, 4 features, 8 inducing
    x = jax.random.normal(key, (N, D), dtype=jnp.float32)
    # deterministic inducing-point selection (module uses torch.randint; take first M_IND)
    xind = x[:M_IND]

    out = jax.block_until_ready(inducing_forward(x, xind))

    # silent sanity check against a pure-JAX f32 reference of the same math
    def ref_rbf(a, b):
        r2 = jnp.sum((a[:, None, :] - b[None, :, :]) ** 2, axis=-1)
        return SIGNAL_VAR * jnp.exp(-0.5 * r2 / (LENGTHSCALE ** 2))

    chol_ref = jnp.linalg.cholesky(ref_rbf(xind, xind) + 1e-6 * jnp.eye(M_IND))
    Minv = jnp.linalg.inv(chol_ref)
    ref = ref_rbf(x, xind) @ Minv.T @ Minv @ ref_rbf(xind, x)
    assert out.shape == (N, N)
    # bf16 MXU operands (f32 accumulation) -> tolerance loosened vs pure-f32 path
    assert jnp.allclose(out, ref, atol=5e-2, rtol=5e-2)

    # also exercise the asymmetric (xx is not x) path with padding
    xx = x[:12]
    out2 = jax.block_until_ready(inducing_forward(x, xind, xx))
    ref2 = ref_rbf(x, xind) @ Minv.T @ Minv @ ref_rbf(xind, xx)
    assert out2.shape == (N, 12)
    assert jnp.allclose(out2, ref2, atol=5e-2, rtol=5e-2)

    print("KERNEL_OK")
</pallas_src>

<mosaic_0001>
module attributes {stable_mosaic.version = 11 : i64} {
  func.func @_rbf_project_body(%arg0: i32, %arg1: memref<64x4xf32, #tpu.memory_space<vmem>>, %arg2: memref<128x4xf32, #tpu.memory_space<vmem>>, %arg3: memref<1x128xf32, #tpu.memory_space<vmem>>, %arg4: memref<128x128xbf16, #tpu.memory_space<vmem>>, %arg5: memref<64x128xbf16, #tpu.memory_space<vmem>>) attributes {dimension_semantics = [#tpu.dimension_semantics<parallel>], iteration_bounds = array<i64: 2>, scalar_prefetch = 0 : i64, scratch_operands = 0 : i64, tpu.core_type = #tpu.core_type<tc>, window_params = [{transform_indices = @transform_0, window_bounds = array<i64: 64, 4>}, {pipeline_mode = #tpu.pipeline_mode<synchronous>, transform_indices = @transform_1, window_bounds = array<i64: 128, 4>}, {pipeline_mode = #tpu.pipeline_mode<synchronous>, transform_indices = @transform_2, window_bounds = array<i64: 1, 128>}, {pipeline_mode = #tpu.pipeline_mode<synchronous>, transform_indices = @transform_3, window_bounds = array<i64: 128, 128>}, {transform_indices = @transform_4, window_bounds = array<i64: 64, 128>}]} {
    %c0 = arith.constant 0 : index
    %c0_0 = arith.constant 0 : index
    %0 = vector.load %arg1[%c0, %c0_0] : memref<64x4xf32, #tpu.memory_space<vmem>>, vector<64x4xf32>
    %c0_1 = arith.constant 0 : index
    %c0_2 = arith.constant 0 : index
    %1 = vector.load %arg2[%c0_1, %c0_2] : memref<128x4xf32, #tpu.memory_space<vmem>>, vector<128x4xf32>
    %cst = arith.constant dense<0.000000e+00> : vector<64x128xf32>
    %2 = tpu.matmul %0, %1, %cst {dimension_numbers = #tpu.dot_dimension_numbers<[1], [1], [0], [0], [0, 0, 1, 0], [], []>} : vector<64x4xf32>, vector<128x4xf32>, vector<64x128xf32> -> vector<64x128xf32>
    %3 = arith.mulf %0, %0 : vector<64x4xf32>
    %cst_3 = arith.constant dense<0.000000e+00> : vector<64xf32>
    %4 = vector.multi_reduction <add>, %3, %cst_3 [1] : vector<64x4xf32> to vector<64xf32>
    %5 = vector.shape_cast %4 : vector<64xf32> to vector<64x1xf32>
    %c0_4 = arith.constant 0 : index
    %c0_5 = arith.constant 0 : index
    %6 = vector.load %arg3[%c0_4, %c0_5] : memref<1x128xf32, #tpu.memory_space<vmem>>, vector<1x128xf32>
    %7 = vector.broadcast %5 : vector<64x1xf32> to vector<64x128xf32>
    %8 = vector.broadcast %6 : vector<1x128xf32> to vector<64x128xf32>
    %9 = arith.addf %7, %8 : vector<64x128xf32>
    %cst_6 = arith.constant 2.000000e+00 : f32
    %10 = vector.broadcast %cst_6 : f32 to vector<64x128xf32>
    %11 = arith.mulf %10, %2 : vector<64x128xf32>
    %12 = arith.subf %9, %11 : vector<64x128xf32>
    %cst_7 = arith.constant 0.000000e+00 : f32
    %13 = vector.broadcast %cst_7 : f32 to vector<64x128xf32>
    %14 = arith.maximumf %12, %13 : vector<64x128xf32>
    %cst_8 = arith.constant -5.000000e-01 : f32
    %15 = vector.broadcast %cst_8 : f32 to vector<64x128xf32>
    %16 = arith.mulf %15, %14 : vector<64x128xf32>
    %17 = math.exp %16 : vector<64x128xf32>
    %cst_9 = arith.constant 1.000000e+00 : f32
    %18 = vector.broadcast %cst_9 : f32 to vector<64x128xf32>
    %19 = arith.mulf %18, %17 : vector<64x128xf32>
    %20 = arith.truncf %19 : vector<64x128xf32> to vector<64x128xbf16>
    %c0_10 = arith.constant 0 : index
    %c0_11 = arith.constant 0 : index
    %21 = vector.load %arg4[%c0_10, %c0_11] : memref<128x128xbf16, #tpu.memory_space<vmem>>, vector<128x128xbf16>
    %cst_12 = arith.constant dense<0.000000e+00> : vector<64x128xf32>
    %22 = tpu.matmul %20, %21, %cst_12 {dimension_numbers = #tpu.dot_dimension_numbers<[1], [0], [0], [1], [0, 0, 1, 1], [], []>} : vector<64x128xbf16>, vector<128x128xbf16>, vector<64x128xf32> -> vector<64x128xf32>
    %23 = arith.truncf %22 : vector<64x128xf32> to vector<64x128xbf16>
    %c0_13 = arith.constant 0 : index
    %c0_14 = arith.constant 0 : index
    %24 = vector.load %arg5[%c0_13, %c0_14] : memref<64x128xbf16, #tpu.memory_space<vmem>>, vector<64x128xbf16>
    tpu.vector_store %arg5[%c0_13, %c0_14], %23 {strides = array<i32>} : memref<64x128xbf16, #tpu.memory_space<vmem>>, vector<64x128xbf16>,
    return
  }
  func.func @transform_0(%arg0: i32) -> (i32, i32) {
    %c0_i32 = arith.constant 0 : i32
    %c0_i32_0 = arith.constant 0 : i32
    return %arg0, %c0_i32 : i32, i32
  }
  func.func @transform_1(%arg0: i32) -> (i32, i32) {
    %c0_i32 = arith.constant 0 : i32
    %c0_i32_0 = arith.constant 0 : i32
    %c0_i32_1 = arith.constant 0 : i32
    return %c0_i32, %c0_i32_0 : i32, i32
  }
  func.func @transform_2(%arg0: i32) -> (i32, i32) {
    %c0_i32 = arith.constant 0 : i32
    %c0_i32_0 = arith.constant 0 : i32
    %c0_i32_1 = arith.constant 0 : i32
    return %c0_i32, %c0_i32_0 : i32, i32
  }
  func.func @transform_3(%arg0: i32) -> (i32, i32) {
    %c0_i32 = arith.constant 0 : i32
    %c0_i32_0 = arith.constant 0 : i32
    %c0_i32_1 = arith.constant 0 : i32
    return %c0_i32, %c0_i32_0 : i32, i32
  }
  func.func @transform_4(%arg0: i32) -> (i32, i32) {
    %c0_i32 = arith.constant 0 : i32
    %c0_i32_0 = arith.constant 0 : i32
    return %arg0, %c0_i32 : i32, i32
  }
}

</mosaic_0001>

<bundles_post_ra>
// kernel: tpu_custom_call.1
= control target key start
LH: loop header
LB: loop body
LE: loop exit
PB: predicated region body
PF: predicated region fallthrough
CT: control target
= control target key end

     0   :  { %9 = vsyncpa [#allocation3], 0  ;;  %s1144_s0 = inlined_call_operand.vmem [shape: f32[128,4], index: 0, kind: input, shape index: {}]   ;;  %s1145_s1 = inlined_call_operand.vmem [shape: f32[128,4], index: 1, kind: input, shape index: {}]   ;;  %s1146_s2 = inlined_call_operand.vmem [shape: f32[1,128], index: 2, kind: input, shape index: {}]   ;;  %s1147_s3 = inlined_call_operand.vmem [shape: bf16[128,128], index: 3, kind: input, shape index: {}]   ;;  %s1148_s4 = inlined_call_operand.hbm [shape: bf16[128,128], index: 4, kind: output, shape index: {}]  }
   0x1   :  { %11 = vsyncpa [#allocation3 + $0x1], 0  ;;  %s901_s15 = smov 0   ;;  %s903_s16 = smov 0  }
   0x2   :  { %s905_s17 = smov 0   ;;  %s907_s18 = smov 0  }
   0x3 LB: > { %s922_s19 = sadd.s32 4294967295, %s872_s18   ;;  %s620_s20 = sadd.s32 4294967294, %s872_s18   ;;  %s872_s18 = sphi %s907_s18, %s1154_s18   ;;  %s868_s17 = sphi %s905_s17, %s1153_s17   ;;  %s864_s16 = sphi %s903_s16, %s1152_s16   ;;  %s860_s15 = sphi %s901_s15, %s1151_s15  }
   0x4   : > { %s926_s21 = sadd.s32 1, %s872_s18   ;;  %s113_s22 = sadd.s32 1, %s868_s17 }
   0x5   : > { %s110_s23 = ssub.s32 %s872_s18, %s926_s21  ;;  %p123_p0 = scmp.ne.s32.totalorder %s868_s17, %s864_s16 }
   0x6   : > { %p111_p1 = scmp.eq.s32.totalorder %s110_s23, 0  ;;  %p124_p2 = scmp.eq.s32.totalorder %s922_s19, 1 }
   0x7   : > { %p129_p3 = scmp.ne.s32.totalorder %s864_s16, %s860_s15  ;;  %p130_p4 = scmp.eq.s32.totalorder %s620_s20, 1 }
   0x8   : > { %s937_s24 = scalar_select %p111_p1, %s868_s17, %s113_s22  }
   0x9   : > { %p939_p5 = por %p124_p2, %p123_p0  ;;  %p943_p6 = por %p130_p4, %p129_p3 }
   0xa   : > { %p623_p7 = scmp.ge.s32.totalorder %s872_s18, 1  ;;  %p166_p8 = scmp.lt.s32.totalorder %s872_s18, 3 }
   0xc   : > { %p167_p9 = pnand %p623_p7, %p166_p8 }
   0xd   : > { %s625_s13 = sshll.u32 (!%p167_p9), %s922_s19, 3  ;;  %s189_s5 = sand.u32 (!%p167_p9), 1, %s864_s16  }
   0xe   : > { %170 = sbr.rel (%p167_p9) target bundleno = 422 (0x1a6), region = 36  ;;  %p193_p10 = scmp.lt.s32.totalorder (!%p167_p9), %s625_s13, 15 }
   0xf   : > { %s696_s8 = sshll.u32 (!%p167_p9), %s922_s19, 5  ;;  %s543_s14 = scalar_lea.sflag (!%p167_p9), [#allocation3], %s189_s5 }
  0x10   : > { %s554_s11 = scalar_lea.hbm (!%p167_p9), %s1148_s4, %s696_s8  ;;  %s830_s27 = scalar_lea.hbm (!%p167_p9), %s1148_s4, 64 }
  0x13   : > { %v222_v0 = vld [vmem:[%s1145_s1 + $0x78] sm:$0xff]  ;;  %vm223_vm0 = vcmask 31744   ;;  %v221_v1 = vld [vmem:[%s1145_s1 + $0x70] sm:$0xff]  ;;  %v220_v2 = vld [vmem:[%s1145_s1 + $0x68] sm:$0xff]  ;;  %s1156_s13 = smov (!%p193_p10, %s625_s13), 15 }
  0x14   : > { %627 = vmatpush.xpose.msk.msra.mxu0 %vm223_vm0, %v222_v0  ;;  %720 = vmatpush.xpose.msk.msra.mxu2 %vm223_vm0, %v222_v0  ;;  %v219_v3 = vld [vmem:[%s1145_s1 + $0x60] sm:$0xff]  ;;  %v218_v4 = vld [vmem:[%s1145_s1 + $0x58] sm:$0xff]  ;;  %v217_v5 = vld [vmem:[%s1145_s1 + $0x50] sm:$0xff]  ;;  %s626_s29 = sshll.u32 %s1156_s13, 3  ;;  %s557_s13 = sshll.u32 %s554_s11, 4  ;;  %s558_s13 = int_to_ptr.hbm [resolvable:$true] %s557_s13 }
  0x15   : > { %721 = vmatpush.xpose.msk.msra.mxu3 %vm223_vm0, %v222_v0  ;;  %v216_v6 = vld [vmem:[%s1145_s1 + $0x48] sm:$0xff]  ;;  %v215_v7 = vld [vmem:[%s1145_s1 + $0x40] sm:$0xff]  ;;  %v214_v8 = vld [vmem:[%s1145_s1 + $0x38] sm:$0xff]  ;;  %s1006_s6 = scalar_lea.vmem %s1144_s0, %s626_s29  ;;  %s824_s20 = sshra.s32 %s558_s13, 4  ;;  %s825_s20 = int_to_ptr.hbm [resolvable:$true] %s824_s20 }
  0x16   : > { %v213_v9 = vld [vmem:[%s1145_s1 + $0x30] sm:$0xff]  ;;  %v199_v10 = vld [vmem:[%s1006_s6] sm:$0xff]  ;;  %v212_v12 = vld [vmem:[%s1145_s1 + $0x28] sm:$0xff]  ;;  %s826_s22 = scalar_lea.hbm %s825_s20, 32  ;;  %p831_p0 = scmp.lt.s32.totalorder %s825_s20, %s1148_s4 }
  0x17   : > { %v337_v11 = vmul.f32 %v199_v10, %v199_v10  ;;  %v211_v14 = vld [vmem:[%s1145_s1 + $0x20] sm:$0xff]  ;;  %v200_v15 = vld [vmem:[%s1006_s6 + $0x8] sm:$0xff]  ;;  %v210_v17 = vld [vmem:[%s1145_s1 + $0x18] sm:$0xff]  ;;  %p827_p11 = scmp.ne.s32.totalorder %s825_s20, %s826_s22  ;;  %p832_p1 = scmp.lt.s32.totalorder %s830_s27, %s826_s22 }
  0x18   : > { %628 = vmatpush.xpose.msk.msra.mxu0 %vm223_vm0, %v221_v1  ;;  %722 = vmatpush.xpose.msk.msra.mxu2 %vm223_vm0, %v221_v1  ;;  %v338_v16 = vmul.f32 %v200_v15, %v200_v15  ;;  %v201_v18 = vld [vmem:[%s1006_s6 + $0x10] sm:$0xff]  ;;  %v203_v19 = vld [vmem:[%s1006_s6 + $0x20] sm:$0xff]  ;;  %v202_v26 = vld [vmem:[%s1006_s6 + $0x18] sm:$0xff] }
  0x19   : > { %723 = vmatpush.xpose.msk.msra.mxu3 %vm223_vm0, %v221_v1  ;;  %v345_v13 = vsel %vm223_vm0, %v337_v11, 0.0  ;;  %v339_v21 = vmul.f32 %v201_v18, %v201_v18  ;;  %v341_v22 = vmul.f32 %v203_v19, %v203_v19  ;;  %v209_v23 = vld [vmem:[%s1145_s1 + $0x10] sm:$0xff]  ;;  %v204_v27 = vld [vmem:[%s1006_s6 + $0x28] sm:$0xff]  ;;  %v340_v28 = vmul.f32 %v202_v26, %v202_v26  ;;  %v695_v35 = vld [vmem:[%s1147_s3 + $0x38] sm:$0xff]  ;;  %p828_p12 = pnand %p827_p11, %p939_p5  ;;  %p833_p2 = por %p832_p1, %p831_p0 }
  0x1a   : > { %346 = vadd.xlane.f32.xlu0 %v345_v13  ;;  %v348_v20 = vsel %vm223_vm0, %v338_v16, 0.0  ;;  %v342_v29 = vmul.f32 %v204_v27, %v204_v27  ;;  %v208_v30 = vld [vmem:[%s1145_s1 + $0x8] sm:$0xff]  ;;  %v205_v31 = vld [vmem:[%s1006_s6 + $0x30] sm:$0xff]  ;;  %v207_v36 = vld [vmem:[%s1145_s1] sm:$0xff]  ;;  %497 = vmatpush.bf16.msra.mxu1 %v695_v35 }
  0x1b   : > { %v351_v24 = vsel %vm223_vm0, %v339_v21, 0.0  ;;  %v357_v25 = vsel %vm223_vm0, %v341_v22, 0.0  ;;  %v354_v32 = vsel %vm223_vm0, %v340_v28, 0.0  ;;  %v343_v34 = vmul.f32 %v205_v31, %v205_v31  ;;  %v206_v37 = vld [vmem:[%s1006_s6 + $0x38] sm:$0xff]  ;;  %v694_v41 = vld [vmem:[%s1147_s3 + $0x30] sm:$0xff]  ;;  %v693_v42 = vld [vmem:[%s1147_s3 + $0x28] sm:$0xff]  ;;  %p829_p13 = pneg %p828_p12 }
  0x1c   : > { %629 = vmatpush.xpose.msk.msra.mxu0 %vm223_vm0, %v220_v2  ;;  %724 = vmatpush.xpose.msk.msra.mxu2 %vm223_vm0, %v220_v2  ;;  %v360_v33 = vsel %vm223_vm0, %v342_v29, 0.0  ;;  %v344_v39 = vmul.f32 %v206_v37, %v206_v37  ;;  %v692_v43 = vld [vmem:[%s1147_s3 + $0x20] sm:$0xff]  ;;  %v691_v44 = vld [vmem:[%s1147_s3 + $0x18] sm:$0xff]  ;;  %v690_v45 = vld [vmem:[%s1147_s3 + $0x10] sm:$0xff]  ;;  %s624_s6 = sshll.u32 %s189_s5, 5 }
  0x1d   : > { %725 = vmatpush.xpose.msk.msra.mxu3 %vm223_vm0, %v220_v2  ;;  %352 = vadd.xlane.f32.xlu1 %v351_v24  ;;  %v363_v38 = vsel %vm223_vm0, %v343_v34, 0.0  ;;  %v689_v46 = vld [vmem:[%s1147_s3 + $0x8] sm:$0xff]  ;;  %v688_v47 = vld [vmem:[%s1147_s3] sm:$0xff]  ;;  %s191_s7 = scalar_lea.vmem [#allocation2], %s624_s6  ;;  %p834_p3 = pnand %p833_p2, %p829_p13 }
  0x1e   : > { %358 = vadd.xlane.f32.xlu2 %v357_v25  ;;  %v366_v40 = vsel %vm223_vm0, %v344_v39, 0.0  ;;  %498 = vmatpush.bf16.msra.mxu1 %v694_v41  ;;  %v1102_v49 = vld [vmem:[%s1146_s2] ss:$0 sm:$0xff]  ;;  %s555_s12 = sshll.u32 %s191_s7, 4  ;;  %s556_s12 = int_to_ptr.vmem [resolvable:$true] %s555_s12 }
  0x20   : > { %630 = vmatpush.xpose.msk.msra.mxu0 %vm223_vm0, %v219_v3  ;;  %726 = vmatpush.xpose.msk.msra.mxu2 %vm223_vm0, %v219_v3 }
  0x21   : > { %727 = vmatpush.xpose.msk.msra.mxu3 %vm223_vm0, %v219_v3 }
  0x22   : > { %349 = vadd.xlane.f32.xlu0 %v348_v20  ;;  %499 = vmatpush.bf16.msra.mxu1 %v693_v42 }
  0x24   : > { %631 = vmatpush.xpose.msk.msra.mxu0 %vm223_vm0, %v218_v4  ;;  %728 = vmatpush.xpose.msk.msra.mxu2 %vm223_vm0, %v218_v4 }
  0x25   : > { %729 = vmatpush.xpose.msk.msra.mxu3 %vm223_vm0, %v218_v4  ;;  %355 = vadd.xlane.f32.xlu1 %v354_v32 }
  0x26   : > { %361 = vadd.xlane.f32.xlu2 %v360_v33  ;;  %500 = vmatpush.bf16.msra.mxu1 %v692_v43 }
  0x28   : > { %632 = vmatpush.xpose.msk.msra.mxu0 %vm223_vm0, %v217_v5  ;;  %730 = vmatpush.xpose.msk.msra.mxu2 %vm223_vm0, %v217_v5 }
  0x29   : > { %731 = vmatpush.xpose.msk.msra.mxu3 %vm223_vm0, %v217_v5 }
  0x2a   : > { %364 = vadd.xlane.f32.xlu0 %v363_v38  ;;  %501 = vmatpush.bf16.msra.mxu1 %v691_v44 }
  0x2c   : > { %633 = vmatpush.xpose.msk.msra.mxu0 %vm223_vm0, %v216_v6  ;;  %732 = vmatpush.xpose.msk.msra.mxu2 %vm223_vm0, %v216_v6 }
  0x2d   : > { %733 = vmatpush.xpose.msk.msra.mxu3 %vm223_vm0, %v216_v6  ;;  %367 = vadd.xlane.f32.xlu1 %v366_v40 }
  0x2e   : > { %502 = vmatpush.bf16.msra.mxu1 %v690_v45 }
  0x30   : > { %634 = vmatpush.xpose.msk.msra.mxu0 %vm223_vm0, %v215_v7  ;;  %734 = vmatpush.xpose.msk.msra.mxu2 %vm223_vm0, %v215_v7 }
  0x31   : > { %735 = vmatpush.xpose.msk.msra.mxu3 %vm223_vm0, %v215_v7 }
  0x32   : > { %503 = vmatpush.bf16.msra.mxu1 %v689_v46 }
  0x34   : > { %635 = vmatpush.xpose.msk.msra.mxu0 %vm223_vm0, %v214_v8  ;;  %736 = vmatpush.xpose.msk.msra.mxu2 %vm223_vm0, %v214_v8 }
  0x35   : > { %737 = vmatpush.xpose.msk.msra.mxu3 %vm223_vm0, %v214_v8 }
  0x36   : > { %504 = vmatpush.bf16.msra.mxu1 %v688_v47 }
  0x38   : > { %636 = vmatpush.xpose.msk.msra.mxu0 %vm223_vm0, %v213_v9  ;;  %738 = vmatpush.xpose.msk.msra.mxu2 %vm223_vm0, %v213_v9 }
  0x39   : > { %739 = vmatpush.xpose.msk.msra.mxu3 %vm223_vm0, %v213_v9 }
  0x3c   : > { %637 = vmatpush.xpose.msk.msra.mxu0 %vm223_vm0, %v212_v12  ;;  %740 = vmatpush.xpose.msk.msra.mxu2 %vm223_vm0, %v212_v12 }
  0x3d   : > { %741 = vmatpush.xpose.msk.msra.mxu3 %vm223_vm0, %v212_v12 }
  0x40   : > { %638 = vmatpush.xpose.msk.msra.mxu0 %vm223_vm0, %v211_v14  ;;  %742 = vmatpush.xpose.msk.msra.mxu2 %vm223_vm0, %v211_v14 }
  0x41   : > { %743 = vmatpush.xpose.msk.msra.mxu3 %vm223_vm0, %v211_v14 }
  0x44   : > { %639 = vmatpush.xpose.msk.msra.mxu0 %vm223_vm0, %v210_v17  ;;  %744 = vmatpush.xpose.msk.msra.mxu2 %vm223_vm0, %v210_v17 }
  0x45   : > { %745 = vmatpush.xpose.msk.msra.mxu3 %vm223_vm0, %v210_v17 }
  0x48   : > { %640 = vmatpush.xpose.msk.msra.mxu0 %vm223_vm0, %v209_v23  ;;  %746 = vmatpush.xpose.msk.msra.mxu2 %vm223_vm0, %v209_v23 }
  0x49   : > { %747 = vmatpush.xpose.msk.msra.mxu3 %vm223_vm0, %v209_v23 }
  0x4c   : > { %641 = vmatpush.xpose.msk.msra.mxu0 %vm223_vm0, %v208_v30  ;;  %748 = vmatpush.xpose.msk.msra.mxu2 %vm223_vm0, %v208_v30 }
  0x4d   : > { %749 = vmatpush.xpose.msk.msra.mxu3 %vm223_vm0, %v208_v30 }
  0x50   : > { %642 = vmatpush.xpose.msk.msra.mxu0 %vm223_vm0, %v207_v36  ;;  %750 = vmatpush.xpose.msk.msra.mxu2 %vm223_vm0, %v207_v36 }
  0x51   : > { %751 = vmatpush.xpose.msk.msra.mxu3 %vm223_vm0, %v207_v36 }
  0x53   : > { %643 = vmatmul.msk.f32.vlgmr.msra.gmra.mxu0 %vm223_vm0, %v199_v10  ;;  %644 = vmatmul.msk.f32.vlgmr.msra.gmra.mxu2 %vm223_vm0, %v200_v15 }
  0x54   : > { %647 = vmatmul.msk.f32.vlgmr.msra.gmra.mxu3 %vm223_vm0, %v203_v19 }
  0x5b   : > { %645 = vmatmul.msk.f32.gmra.mxu2 %vm223_vm0, %v201_v18 }
  0x5c   : > { %648 = vmatmul.msk.f32.gmra.mxu3 %vm223_vm0, %v204_v27 }
  0x63   : > { %646 = vmatmul.msk.f32.gmra.mxu2 %vm223_vm0, %v202_v26 }
  0x64   : > { %649 = vmatmul.msk.f32.gmra.mxu3 %vm223_vm0, %v205_v31 }
  0x6c   : > { %650 = vmatmul.msk.f32.gmra.mxu3 %vm223_vm0, %v206_v37 }
  0x8d   : > { %v347_v48 = vpop.xlane.xlu0 %346 }
  0x8e   : > { %v373_v51 = vadd.f32 %v1102_v49, %v347_v48 }
  0x90   : > { %v353_v60 = vpop.xlane.xlu1 %352 }
  0x91   : > { %v375_v2 = vadd.f32 %v1102_v49, %v353_v60  ;;  %v359_v4 = vpop.xlane.xlu2 %358 }
  0x92   : > { %v377_v20 = vadd.f32 %v1102_v49, %v359_v4 }
  0x95   : > { %v350_v53 = vpop.xlane.xlu0 %349 }
  0x96   : > { %v374_v56 = vadd.f32 %v1102_v49, %v350_v53 }
  0x98   : > { %v356_v8 = vpop.xlane.xlu1 %355 }
  0x99   : > { %v376_v11 = vadd.f32 %v1102_v49, %v356_v8  ;;  %v362_v18 = vpop.xlane.xlu2 %361 }
  0x9a   : > { %v378_v23 = vadd.f32 %v1102_v49, %v362_v18 }
  0x9d   : > { %v365_v37 = vpop.xlane.xlu0 %364 }
  0x9e   : > { %v379_v43 = vadd.f32 %v1102_v49, %v365_v37 }
  0xa0   : > { %v368_v40 = vpop.xlane.xlu1 %367 }
  0xa1   : > { %v380_v46 = vadd.f32 %v1102_v49, %v368_v40 }
  0xd0   : > { %v313_v50 = vpop.f32.mrf.mxu0 }
  0xd1   : > { %v381_v52 = vmul.f32 2.0, %v313_v50 }
  0xd3   : > { %v389_v54 = vsub.f32 %v373_v51, %v381_v52 }
  0xd5   : > { %v397_v55 = vmax.f32 %v389_v54, 0.0 }
  0xd6   : > { %v316_v57 = vpop.f32.mrf.mxu2 }
  0xd7   : > { %v382_v58 = vmul.f32 2.0, %v316_v57  ;;  %v405_v59 = vmul.f32 -0.5, %v397_v55  ;;  %v325_v62 = vpop.f32.mrf.mxu3 }
  0xd8   : > { %v385_v21 = vmul.f32 2.0, %v325_v62 }
  0xd9   : > { %v390_v61 = vsub.f32 %v374_v56, %v382_v58  ;;  %v413_v0 = vmul.f32 1.442695, %v405_v59 }
  0xda   : > { %v393_v27 = vsub.f32 %v377_v20, %v385_v21 }
  0xdb   : > { %v398_v63 = vmax.f32 %v390_v61, 0.0  ;;  %794 = vpow2.f32 %v413_v0 }
  0xdc   : > { %v401_v31 = vmax.f32 %v393_v27, 0.0 }
  0xdd   : > { %v406_v1 = vmul.f32 -0.5, %v398_v63 }
  0xde   : > { %v319_v3 = vpop.f32.mrf.mxu2  ;;  %v409_v34 = vmul.f32 -0.5, %v401_v31 }
  0xdf   : > { %v415_v5 = vmul.f32 1.442695, %v406_v1  ;;  %v383_v6 = vmul.f32 2.0, %v319_v3  ;;  %v328_v10 = vpop.f32.mrf.mxu3 }
  0xe0   : > { %v386_v24 = vmul.f32 2.0, %v328_v10  ;;  %v421_v41 = vmul.f32 1.442695, %v409_v34 }
  0xe1   : > { %796 = vpow2.f32 %v415_v5  ;;  %v391_v7 = vsub.f32 %v375_v2, %v383_v6  ;;  %v795_v12 = vpop.eup %794 }
  0xe2   : > { %v394_v30 = vsub.f32 %v378_v23, %v386_v24 }
  0xe3   : > { %v399_v9 = vmax.f32 %v391_v7, 0.0 }
  0xe4   : > { %v402_v32 = vmax.f32 %v394_v30, 0.0 }
  0xe5   : > { %v407_v16 = vmul.f32 -0.5, %v399_v9 }
  0xe6   : > { %v322_v13 = vpop.f32.mrf.mxu2  ;;  %v410_v36 = vmul.f32 -0.5, %v402_v32 }
  0xe7   : > { %v797_v14 = vpop.eup %796  ;;  %v384_v15 = vmul.f32 2.0, %v322_v13  ;;  %v417_v25 = vmul.f32 1.442695, %v407_v16  ;;  %v331_v28 = vpop.f32.mrf.mxu3 }
  0xe8   : > { %v429_v17 = vpack.c.bf16 %v797_v14, %v795_v12  ;;  %v387_v42 = vmul.f32 2.0, %v331_v28  ;;  %v423_v44 = vmul.f32 1.442695, %v410_v36 }
  0xe9   : > { %v392_v19 = vsub.f32 %v376_v11, %v384_v15  ;;  %798 = vpow2.f32 %v417_v25 }
  0xea   : > { %505 = vmatmul.bf16.vlgmr.msra.gmra.mxu1 %v429_v17  ;;  %v395_v47 = vsub.f32 %v379_v43, %v387_v42 }
  0xeb   : > { %v400_v22 = vmax.f32 %v392_v19, 0.0 }
  0xec   : > { %v403_v50 = vmax.f32 %v395_v47, 0.0 }
  0xed   : > { %v408_v26 = vmul.f32 -0.5, %v400_v22 }
  0xee   : > { %v411_v54 = vmul.f32 -0.5, %v403_v50 }
  0xef   : > { %v419_v29 = vmul.f32 1.442695, %v408_v26  ;;  %v799_v33 = vpop.eup %798  ;;  %v334_v39 = vpop.f32.mrf.mxu3 }
  0xf0   : > { %v388_v45 = vmul.f32 2.0, %v334_v39  ;;  %v425_v57 = vmul.f32 1.442695, %v411_v54 }
  0xf1   : > { %800 = vpow2.f32 %v419_v29 }
  0xf2   : > { %802 = vpow2.f32 %v421_v41  ;;  %v396_v48 = vsub.f32 %v380_v46, %v388_v45 }
  0xf3   : > { %804 = vpow2.f32 %v423_v44 }
  0xf4   : > { %v404_v51 = vmax.f32 %v396_v48, 0.0  ;;  %806 = vpow2.f32 %v425_v57 }
  0xf6   : > { %v412_v55 = vmul.f32 -0.5, %v404_v51 }
  0xf7   : > { %v801_v35 = vpop.eup %800 }
  0xf8   : > { %v430_v38 = vpack.c.bf16 %v801_v35, %v799_v33  ;;  %v803_v52 = vpop.eup %802  ;;  %v427_v58 = vmul.f32 1.442695, %v412_v55 }
  0xf9   : > { %v805_v53 = vpop.eup %804 }
  0xfa   : > { %510 = vmatmul.bf16.gmra.mxu1 %v430_v38  ;;  %v431_v56 = vpack.c.bf16 %v805_v53, %v803_v52  ;;  %808 = vpow2.f32 %v427_v58  ;;  %v807_v59 = vpop.eup %806 }
 0x100   : > { %v809_v60 = vpop.eup %808 }
 0x101   : > { %v432_v49 = vpack.c.bf16 %v809_v60, %v807_v59 }
 0x10a   : > { %515 = vmatmul.bf16.gmra.mxu1 %v431_v56 }
 0x11a   : > { %520 = vmatmul.bf16.gmra.mxu1 %v432_v49 }
 0x167   : > { %v506_v61 = vpop.f32.mrf.mxu1 }
 0x16f   : > { %v508_v62 = vpop.f32.mrf.mxu1 }
 0x170   : > { %v700_v63 = vpack.c.bf16 %v508_v62, %v506_v61 }
 0x172   : > { %701 = vst [vmem:[%s191_s7] sm:$0xff] %v700_v63  }
 0x177   : > { %v511_v0 = vpop.f32.mrf.mxu1 }
 0x17f   : > { %v513_v1 = vpop.f32.mrf.mxu1 }
 0x180   : > { %v705_v2 = vpack.c.bf16 %v513_v1, %v511_v0 }
 0x182   : > { %717 = vst [vmem:[%s191_s7 + $0x8] sm:$0xff] %v705_v2  }
 0x187   : > { %v516_v3 = vpop.f32.mrf.mxu1 }
 0x18f   : > { %v518_v4 = vpop.f32.mrf.mxu1 }
 0x190   : > { %v710_v5 = vpack.c.bf16 %v518_v4, %v516_v3 }
 0x192   : > { %718 = vst [vmem:[%s191_s7 + $0x10] sm:$0xff] %v710_v5  }
 0x197   : > { %v521_v6 = vpop.f32.mrf.mxu1 }
 0x19f   : > { %v523_v7 = vpop.f32.mrf.mxu1 }
 0x1a0   : > { %v715_v8 = vpack.c.bf16 %v523_v7, %v521_v6 }
 0x1a2   : > { %719 = vst [vmem:[%s191_s7 + $0x18] sm:$0xff] %v715_v8  }
 0x1a3   : > { %837 = shalt.err (!%p834_p3)
}
 0x1a4   : > { %s874_s30 = smov 64   ;;  %s875_s5 = smov 4  }
 0x1a5   : > { %752 = dma.vmem_to_hbm [thread:$0]  (%p939_p5), %s556_s12, 512, %s558_s13, %s543_s14, %s874_s30, %s874_s30, %s875_s5  }
 0x1a6 PF: > { %p758_p4 = scmp.ge.s32.totalorder %s872_s18, 2  ;;  %s572_s6 = sand.u32 1, %s860_s15  }
 0x1a7   : > { %s573_s7 = scalar_lea.sflag [#allocation3], %s572_s6 }
 0x1a8   : > { %p755_p7 = pnand %p758_p4, %p943_p6 }
 0x1aa   : > { %p756_p8 = pneg %p755_p7 }
 0x1ac   : > { %855 = dma.done.wait (%p756_p8), %s573_s7, 512  }
 0x1ad   : > { %857 = vsyncadd (%p756_p8), %s573_s7, 4294966784  ;;  %p14_p9 = scmp.ge.s32.totalorder %s926_s21, 4   ;;  %s1151_s15 = smov %s864_s16 }
 0x1ae   : > { %s1152_s16 = smov %s868_s17  ;;  %s1153_s17 = smov %s937_s24 }
 0x1af   : > { %s1154_s18 = smov %s926_s21  ;;  %16 = sbr.rel (!%p14_p9) target bundleno = 3 (0x3), region = 71 }
 0x1b4   :  { %579 = vsyncpa [#allocation3], 1 }
 0x1b5   :  { %581 = vsyncpa [#allocation3 + $0x1], 1 }

</bundles_post_ra>
